<compile_context>
chip_gen: v7x
topology: tpu7x:2x2x1
jax: 0.10.0
libtpu: 0.0.40
codegen_flags: <defaults>
</compile_context>

<pallas_src>
import math

import jax
import jax.numpy as jnp
from jax.experimental import pallas as pl
from jax.experimental.pallas import tpu as pltpu


def qnetwork_kernel(alpha_ref,                    # SMEM (4,) f32 : PReLU slopes
                    x_ref,                        # VMEM (TILE_N, D_in)
                    w1_ref, b1_ref,
                    w2_ref, b2_ref,
                    w3_ref, b3_ref,
                    w4_ref, b4_ref,
                    wf_ref, bf_ref,
                    out_ref):                     # VMEM (TILE_N, D_out)
    cdt = w1_ref.dtype                            # MXU streaming dtype

    def prelu(h, a):                              # h is the f32 accumulator
        return jnp.where(h > 0, h, a * h)

    h = jnp.dot(x_ref[...], w1_ref[...],
                preferred_element_type=jnp.float32) + b1_ref[...]
    h = prelu(h, alpha_ref[0])

    h = jnp.dot(h.astype(cdt), w2_ref[...],
                preferred_element_type=jnp.float32) + b2_ref[...]
    h = prelu(h, alpha_ref[1])

    h = jnp.dot(h.astype(cdt), w3_ref[...],
                preferred_element_type=jnp.float32) + b3_ref[...]
    h = prelu(h, alpha_ref[2])

    h = jnp.dot(h.astype(cdt), w4_ref[...],
                preferred_element_type=jnp.float32) + b4_ref[...]
    h = prelu(h, alpha_ref[3])

    q = jnp.dot(h.astype(cdt), wf_ref[...],
                preferred_element_type=jnp.float32) + bf_ref[...]
    out_ref[...] = q.astype(out_ref.dtype)


def _round_up(v, m):
    return (v + m - 1) // m * m


def qnetwork_forward(x, params, *, tile_n=8192, compute_dtype=jnp.bfloat16,
                     vmem_limit_bytes=32 * 1024 * 1024):
    """params = (alphas, [(W1,b1),...,(W4,b4),(Wf,bf)]), W_k: (in, out)."""
    alphas, layers = params
    n, d_in = x.shape
    hidden = layers[0][0].shape[1]
    d_out = layers[-1][0].shape[1]
    out_dtype = x.dtype
    cdt = jnp.dtype(compute_dtype) if compute_dtype is not None else x.dtype

    # Batch tiling: tile is a multiple of 8, clipped for small batches.
    tile_n = _round_up(max(8, tile_n), 8)
    n8 = _round_up(n, 8)
    if n8 <= tile_n:
        tile_n = n8                               # single tile, no row padding waste
    n_p = _round_up(n, tile_n)
    grid = (n_p // tile_n,)

    x_p = x.astype(cdt)
    if n_p != n:
        x_p = jnp.pad(x_p, ((0, n_p - n), (0, 0)))

    # Weights streamed in cdt, biases kept f32 (added on the f32 accumulator).
    # Constant index_maps keep them VMEM-resident across all grid steps (one
    # DMA each, not per-step).
    flat_args = []
    weight_specs = []
    for (w, b) in layers:
        w = w.astype(cdt)
        b = b.reshape(1, -1).astype(jnp.float32)
        flat_args += [w, b]
        weight_specs += [
            pl.BlockSpec(w.shape, lambda i: (0, 0)),
            pl.BlockSpec(b.shape, lambda i: (0, 0)),
        ]

    smem_spec = pl.BlockSpec(memory_space=pltpu.MemorySpace.SMEM)
    # Default depth-2 pipelining: x tiles are tiny and the narrow output
    # writeback is no longer the exposed DMA, so deeper buffering buys nothing.
    x_spec = pl.BlockSpec((tile_n, d_in), lambda i: (i, 0))
    out_spec = pl.BlockSpec((tile_n, d_out), lambda i: (i, 0))

    flops = 2 * n * (d_in * hidden + 3 * hidden * hidden + hidden * d_out)
    bytes_accessed = (n_p * d_in * int(jnp.dtype(cdt).itemsize)
                      + n_p * d_out * int(jnp.dtype(out_dtype).itemsize)
                      + sum(int(a.size) * int(a.dtype.itemsize)
                            for a in flat_args))
    cost = pl.CostEstimate(flops=int(flops), transcendentals=0,
                           bytes_accessed=int(bytes_accessed))

    out_p = pl.pallas_call(
        qnetwork_kernel,
        out_shape=jax.ShapeDtypeStruct((n_p, d_out), out_dtype),
        grid=grid,
        in_specs=[smem_spec, x_spec] + weight_specs,
        out_specs=out_spec,
        compiler_params=pltpu.CompilerParams(
            dimension_semantics=("parallel",),
            vmem_limit_bytes=vmem_limit_bytes),
        cost_estimate=cost,
    )(alphas.astype(jnp.float32), x_p, *flat_args)

    return out_p[:n, :]


def init_qnetwork_params(key, input_dim, output_dim, hidden_dim,
                         dtype=jnp.float32):
    """Deterministic init mimicking torch.nn.Linear (uniform +/- 1/sqrt(fan_in))
    and PReLU(init=0.25)."""
    dims = [(input_dim, hidden_dim),
            (hidden_dim, hidden_dim),
            (hidden_dim, hidden_dim),
            (hidden_dim, hidden_dim),
            (hidden_dim, output_dim)]
    layers = []
    for (fan_in, fan_out) in dims:
        key, kw, kb = jax.random.split(key, 3)
        bound = 1.0 / math.sqrt(fan_in)
        w = jax.random.uniform(kw, (fan_in, fan_out), dtype, -bound, bound)
        b = jax.random.uniform(kb, (fan_out,), dtype, -bound, bound)
        layers.append((w, b))
    alphas = jnp.full((4,), 0.25, dtype=jnp.float32)
    return alphas, layers


def qnetwork_ref(x, params):
    """Pure-JAX reference for correctness checking."""
    alphas, layers = params
    h = x
    for i, (w, b) in enumerate(layers[:-1]):
        h = h @ w + b
        h = jnp.where(h > 0, h, alphas[i] * h)
    wf, bf = layers[-1]
    return h @ wf + bf


if __name__ == "__main__":
    input_dim, hidden_dim, output_dim = 4, 32, 3

    key = jax.random.PRNGKey(0)
    key, kx = jax.random.split(key)
    params = init_qnetwork_params(key, input_dim, output_dim, hidden_dim)

    # Small-batch check (matches the PyTorch spec's 2-D (n, input_dim) state),
    # exact f32 path.
    x_small = jax.random.normal(kx, (2, input_dim), jnp.float32)
    out = jax.block_until_ready(
        qnetwork_forward(x_small, params, compute_dtype=jnp.float32))
    ref = qnetwork_ref(x_small, params)
    assert out.shape == (2, output_dim), out.shape
    assert jnp.allclose(out, ref, atol=1e-5, rtol=1e-5), (out, ref)

    # Larger, non-multiple batch with a small tile exercises the grid +
    # row-padding path (f32 compute for tight tolerance).
    key, kx2 = jax.random.split(key)
    x_big = jax.random.normal(kx2, (1037, input_dim), jnp.float32)
    out_big = jax.block_until_ready(
        qnetwork_forward(x_big, params, tile_n=512,
                         compute_dtype=jnp.float32))
    ref_big = qnetwork_ref(x_big, params)
    assert out_big.shape == (1037, output_dim), out_big.shape
    assert jnp.allclose(out_big, ref_big, atol=1e-4, rtol=1e-4)

    # Default path: bf16 streaming (f32 MXU accumulation), big tile -> 1 step.
    out_bf16 = jax.block_until_ready(qnetwork_forward(x_big, params))
    assert out_bf16.shape == (1037, output_dim), out_bf16.shape
    assert jnp.allclose(out_bf16, ref_big, atol=5e-2, rtol=5e-2)

    print("KERNEL_OK")
</pallas_src>

<mosaic_0001>
module attributes {stable_mosaic.version = 11 : i64} {
  func.func @qnetwork_kernel(%arg0: i32, %arg1: memref<4xf32, #tpu.memory_space<smem>>, %arg2: memref<8x4xf32, #tpu.memory_space<vmem>>, %arg3: memref<4x32xf32, #tpu.memory_space<vmem>>, %arg4: memref<1x32xf32, #tpu.memory_space<vmem>>, %arg5: memref<32x32xf32, #tpu.memory_space<vmem>>, %arg6: memref<1x32xf32, #tpu.memory_space<vmem>>, %arg7: memref<32x32xf32, #tpu.memory_space<vmem>>, %arg8: memref<1x32xf32, #tpu.memory_space<vmem>>, %arg9: memref<32x32xf32, #tpu.memory_space<vmem>>, %arg10: memref<1x32xf32, #tpu.memory_space<vmem>>, %arg11: memref<32x3xf32, #tpu.memory_space<vmem>>, %arg12: memref<1x3xf32, #tpu.memory_space<vmem>>, %arg13: memref<8x3xf32, #tpu.memory_space<vmem>>) attributes {dimension_semantics = [#tpu.dimension_semantics<parallel>], iteration_bounds = array<i64: 1>, scalar_prefetch = 0 : i64, scratch_operands = 0 : i64, tpu.core_type = #tpu.core_type<tc>, window_params = [{transform_indices = @transform_0, window_bounds = array<i64: 4>}, {transform_indices = @transform_1, window_bounds = array<i64: 8, 4>}, {pipeline_mode = #tpu.pipeline_mode<synchronous>, transform_indices = @transform_2, window_bounds = array<i64: 4, 32>}, {pipeline_mode = #tpu.pipeline_mode<synchronous>, transform_indices = @transform_3, window_bounds = array<i64: 1, 32>}, {pipeline_mode = #tpu.pipeline_mode<synchronous>, transform_indices = @transform_4, window_bounds = array<i64: 32, 32>}, {pipeline_mode = #tpu.pipeline_mode<synchronous>, transform_indices = @transform_5, window_bounds = array<i64: 1, 32>}, {pipeline_mode = #tpu.pipeline_mode<synchronous>, transform_indices = @transform_6, window_bounds = array<i64: 32, 32>}, {pipeline_mode = #tpu.pipeline_mode<synchronous>, transform_indices = @transform_7, window_bounds = array<i64: 1, 32>}, {pipeline_mode = #tpu.pipeline_mode<synchronous>, transform_indices = @transform_8, window_bounds = array<i64: 32, 32>}, {pipeline_mode = #tpu.pipeline_mode<synchronous>, transform_indices = @transform_9, window_bounds = array<i64: 1, 32>}, {pipeline_mode = #tpu.pipeline_mode<synchronous>, transform_indices = @transform_10, window_bounds = array<i64: 32, 3>}, {pipeline_mode = #tpu.pipeline_mode<synchronous>, transform_indices = @transform_11, window_bounds = array<i64: 1, 3>}, {transform_indices = @transform_12, window_bounds = array<i64: 8, 3>}]} {
    %c0 = arith.constant 0 : index
    %c0_0 = arith.constant 0 : index
    %0 = vector.load %arg2[%c0, %c0_0] : memref<8x4xf32, #tpu.memory_space<vmem>>, vector<8x4xf32>
    %c0_1 = arith.constant 0 : index
    %c0_2 = arith.constant 0 : index
    %1 = vector.load %arg3[%c0_1, %c0_2] : memref<4x32xf32, #tpu.memory_space<vmem>>, vector<4x32xf32>
    %cst = arith.constant dense<0.000000e+00> : vector<8x32xf32>
    %2 = tpu.matmul %0, %1, %cst {dimension_numbers = #tpu.dot_dimension_numbers<[1], [0], [0], [1], [0, 0, 1, 1], [], []>} : vector<8x4xf32>, vector<4x32xf32>, vector<8x32xf32> -> vector<8x32xf32>
    %c0_3 = arith.constant 0 : index
    %c0_4 = arith.constant 0 : index
    %3 = vector.load %arg4[%c0_3, %c0_4] : memref<1x32xf32, #tpu.memory_space<vmem>>, vector<1x32xf32>
    %4 = vector.broadcast %3 : vector<1x32xf32> to vector<8x32xf32>
    %5 = arith.addf %2, %4 : vector<8x32xf32>
    %c0_5 = arith.constant 0 : index
    %6 = memref.load %arg1[%c0_5] : memref<4xf32, #tpu.memory_space<smem>>
    %cst_6 = arith.constant 0.000000e+00 : f32
    %7 = vector.broadcast %cst_6 : f32 to vector<8x32xf32>
    %8 = arith.cmpf ogt, %5, %7 : vector<8x32xf32>
    %9 = vector.broadcast %6 : f32 to vector<8x32xf32>
    %10 = arith.mulf %9, %5 : vector<8x32xf32>
    %11 = arith.select %8, %5, %10 : vector<8x32xi1>, vector<8x32xf32>
    %c0_7 = arith.constant 0 : index
    %c0_8 = arith.constant 0 : index
    %12 = vector.load %arg5[%c0_7, %c0_8] : memref<32x32xf32, #tpu.memory_space<vmem>>, vector<32x32xf32>
    %cst_9 = arith.constant dense<0.000000e+00> : vector<8x32xf32>
    %13 = tpu.matmul %11, %12, %cst_9 {dimension_numbers = #tpu.dot_dimension_numbers<[1], [0], [0], [1], [0, 0, 1, 1], [], []>} : vector<8x32xf32>, vector<32x32xf32>, vector<8x32xf32> -> vector<8x32xf32>
    %c0_10 = arith.constant 0 : index
    %c0_11 = arith.constant 0 : index
    %14 = vector.load %arg6[%c0_10, %c0_11] : memref<1x32xf32, #tpu.memory_space<vmem>>, vector<1x32xf32>
    %15 = vector.broadcast %14 : vector<1x32xf32> to vector<8x32xf32>
    %16 = arith.addf %13, %15 : vector<8x32xf32>
    %c1 = arith.constant 1 : index
    %17 = memref.load %arg1[%c1] : memref<4xf32, #tpu.memory_space<smem>>
    %cst_12 = arith.constant 0.000000e+00 : f32
    %18 = vector.broadcast %cst_12 : f32 to vector<8x32xf32>
    %19 = arith.cmpf ogt, %16, %18 : vector<8x32xf32>
    %20 = vector.broadcast %17 : f32 to vector<8x32xf32>
    %21 = arith.mulf %20, %16 : vector<8x32xf32>
    %22 = arith.select %19, %16, %21 : vector<8x32xi1>, vector<8x32xf32>
    %c0_13 = arith.constant 0 : index
    %c0_14 = arith.constant 0 : index
    %23 = vector.load %arg7[%c0_13, %c0_14] : memref<32x32xf32, #tpu.memory_space<vmem>>, vector<32x32xf32>
    %cst_15 = arith.constant dense<0.000000e+00> : vector<8x32xf32>
    %24 = tpu.matmul %22, %23, %cst_15 {dimension_numbers = #tpu.dot_dimension_numbers<[1], [0], [0], [1], [0, 0, 1, 1], [], []>} : vector<8x32xf32>, vector<32x32xf32>, vector<8x32xf32> -> vector<8x32xf32>
    %c0_16 = arith.constant 0 : index
    %c0_17 = arith.constant 0 : index
    %25 = vector.load %arg8[%c0_16, %c0_17] : memref<1x32xf32, #tpu.memory_space<vmem>>, vector<1x32xf32>
    %26 = vector.broadcast %25 : vector<1x32xf32> to vector<8x32xf32>
    %27 = arith.addf %24, %26 : vector<8x32xf32>
    %c2 = arith.constant 2 : index
    %28 = memref.load %arg1[%c2] : memref<4xf32, #tpu.memory_space<smem>>
    %cst_18 = arith.constant 0.000000e+00 : f32
    %29 = vector.broadcast %cst_18 : f32 to vector<8x32xf32>
    %30 = arith.cmpf ogt, %27, %29 : vector<8x32xf32>
    %31 = vector.broadcast %28 : f32 to vector<8x32xf32>
    %32 = arith.mulf %31, %27 : vector<8x32xf32>
    %33 = arith.select %30, %27, %32 : vector<8x32xi1>, vector<8x32xf32>
    %c0_19 = arith.constant 0 : index
    %c0_20 = arith.constant 0 : index
    %34 = vector.load %arg9[%c0_19, %c0_20] : memref<32x32xf32, #tpu.memory_space<vmem>>, vector<32x32xf32>
    %cst_21 = arith.constant dense<0.000000e+00> : vector<8x32xf32>
    %35 = tpu.matmul %33, %34, %cst_21 {dimension_numbers = #tpu.dot_dimension_numbers<[1], [0], [0], [1], [0, 0, 1, 1], [], []>} : vector<8x32xf32>, vector<32x32xf32>, vector<8x32xf32> -> vector<8x32xf32>
    %c0_22 = arith.constant 0 : index
    %c0_23 = arith.constant 0 : index
    %36 = vector.load %arg10[%c0_22, %c0_23] : memref<1x32xf32, #tpu.memory_space<vmem>>, vector<1x32xf32>
    %37 = vector.broadcast %36 : vector<1x32xf32> to vector<8x32xf32>
    %38 = arith.addf %35, %37 : vector<8x32xf32>
    %c3 = arith.constant 3 : index
    %39 = memref.load %arg1[%c3] : memref<4xf32, #tpu.memory_space<smem>>
    %cst_24 = arith.constant 0.000000e+00 : f32
    %40 = vector.broadcast %cst_24 : f32 to vector<8x32xf32>
    %41 = arith.cmpf ogt, %38, %40 : vector<8x32xf32>
    %42 = vector.broadcast %39 : f32 to vector<8x32xf32>
    %43 = arith.mulf %42, %38 : vector<8x32xf32>
    %44 = arith.select %41, %38, %43 : vector<8x32xi1>, vector<8x32xf32>
    %c0_25 = arith.constant 0 : index
    %c0_26 = arith.constant 0 : index
    %45 = vector.load %arg11[%c0_25, %c0_26] : memref<32x3xf32, #tpu.memory_space<vmem>>, vector<32x3xf32>
    %cst_27 = arith.constant dense<0.000000e+00> : vector<8x3xf32>
    %46 = tpu.matmul %44, %45, %cst_27 {dimension_numbers = #tpu.dot_dimension_numbers<[1], [0], [0], [1], [0, 0, 1, 1], [], []>} : vector<8x32xf32>, vector<32x3xf32>, vector<8x3xf32> -> vector<8x3xf32>
    %c0_28 = arith.constant 0 : index
    %c0_29 = arith.constant 0 : index
    %47 = vector.load %arg12[%c0_28, %c0_29] : memref<1x3xf32, #tpu.memory_space<vmem>>, vector<1x3xf32>
    %48 = vector.broadcast %47 : vector<1x3xf32> to vector<8x3xf32>
    %49 = arith.addf %46, %48 : vector<8x3xf32>
    %c0_30 = arith.constant 0 : index
    %c0_31 = arith.constant 0 : index
    %50 = vector.load %arg13[%c0_30, %c0_31] : memref<8x3xf32, #tpu.memory_space<vmem>>, vector<8x3xf32>
    tpu.vector_store %arg13[%c0_30, %c0_31], %49 {strides = array<i32>} : memref<8x3xf32, #tpu.memory_space<vmem>>, vector<8x3xf32>,
    return
  }
  func.func @transform_0(%arg0: i32) -> i32 {
    %c0_i32 = arith.constant 0 : i32
    %c0_i32_0 = arith.constant 0 : i32
    return %c0_i32 : i32
  }
  func.func @transform_1(%arg0: i32) -> (i32, i32) {
    %c0_i32 = arith.constant 0 : i32
    %c0_i32_0 = arith.constant 0 : i32
    return %arg0, %c0_i32 : i32, i32
  }
  func.func @transform_2(%arg0: i32) -> (i32, i32) {
    %c0_i32 = arith.constant 0 : i32
    %c0_i32_0 = arith.constant 0 : i32
    %c0_i32_1 = arith.constant 0 : i32
    return %c0_i32, %c0_i32_0 : i32, i32
  }
  func.func @transform_3(%arg0: i32) -> (i32, i32) {
    %c0_i32 = arith.constant 0 : i32
    %c0_i32_0 = arith.constant 0 : i32
    %c0_i32_1 = arith.constant 0 : i32
    return %c0_i32, %c0_i32_0 : i32, i32
  }
  func.func @transform_4(%arg0: i32) -> (i32, i32) {
    %c0_i32 = arith.constant 0 : i32
    %c0_i32_0 = arith.constant 0 : i32
    %c0_i32_1 = arith.constant 0 : i32
    return %c0_i32, %c0_i32_0 : i32, i32
  }
  func.func @transform_5(%arg0: i32) -> (i32, i32) {
    %c0_i32 = arith.constant 0 : i32
    %c0_i32_0 = arith.constant 0 : i32
    %c0_i32_1 = arith.constant 0 : i32
    return %c0_i32, %c0_i32_0 : i32, i32
  }
  func.func @transform_6(%arg0: i32) -> (i32, i32) {
    %c0_i32 = arith.constant 0 : i32
    %c0_i32_0 = arith.constant 0 : i32
    %c0_i32_1 = arith.constant 0 : i32
    return %c0_i32, %c0_i32_0 : i32, i32
  }
  func.func @transform_7(%arg0: i32) -> (i32, i32) {
    %c0_i32 = arith.constant 0 : i32
    %c0_i32_0 = arith.constant 0 : i32
    %c0_i32_1 = arith.constant 0 : i32
    return %c0_i32, %c0_i32_0 : i32, i32
  }
  func.func @transform_8(%arg0: i32) -> (i32, i32) {
    %c0_i32 = arith.constant 0 : i32
    %c0_i32_0 = arith.constant 0 : i32
    %c0_i32_1 = arith.constant 0 : i32
    return %c0_i32, %c0_i32_0 : i32, i32
  }
  func.func @transform_9(%arg0: i32) -> (i32, i32) {
    %c0_i32 = arith.constant 0 : i32
    %c0_i32_0 = arith.constant 0 : i32
    %c0_i32_1 = arith.constant 0 : i32
    return %c0_i32, %c0_i32_0 : i32, i32
  }
  func.func @transform_10(%arg0: i32) -> (i32, i32) {
    %c0_i32 = arith.constant 0 : i32
    %c0_i32_0 = arith.constant 0 : i32
    %c0_i32_1 = arith.constant 0 : i32
    return %c0_i32, %c0_i32_0 : i32, i32
  }
  func.func @transform_11(%arg0: i32) -> (i32, i32) {
    %c0_i32 = arith.constant 0 : i32
    %c0_i32_0 = arith.constant 0 : i32
    %c0_i32_1 = arith.constant 0 : i32
    return %c0_i32, %c0_i32_0 : i32, i32
  }
  func.func @transform_12(%arg0: i32) -> (i32, i32) {
    %c0_i32 = arith.constant 0 : i32
    %c0_i32_0 = arith.constant 0 : i32
    return %arg0, %c0_i32 : i32, i32
  }
}

</mosaic_0001>

<bundles_post_ra>
// kernel: tpu_custom_call.1
= control target key start
LH: loop header
LB: loop body
LE: loop exit
PB: predicated region body
PF: predicated region fallthrough
CT: control target
= control target key end

     0   :  { %17 = vsyncpa [#allocation4], 0  ;;  %s929_s0 = inlined_call_operand.vmem [shape: f32[4], index: 0, kind: input, shape index: {}]   ;;  %s930_s1 = inlined_call_operand.vmem [shape: f32[8,4], index: 1, kind: input, shape index: {}]   ;;  %s931_s2 = inlined_call_operand.hbm [shape: f32[4,32], index: 2, kind: input, shape index: {}]   ;;  %s932_s3 = inlined_call_operand.vmem [shape: f32[1,32], index: 3, kind: input, shape index: {}]   ;;  %s933_s4 = inlined_call_operand.vmem [shape: f32[32,32], index: 4, kind: input, shape index: {}]   ;;  %s934_s5 = inlined_call_operand.hbm [shape: f32[1,32], index: 5, kind: input, shape index: {}]   ;;  %s935_s6 = inlined_call_operand.vmem [shape: f32[32,32], index: 6, kind: input, shape index: {}]   ;;  %s936_s7 = inlined_call_operand.vmem [shape: f32[1,32], index: 7, kind: input, shape index: {}]   ;;  %s937_s8 = inlined_call_operand.hbm [shape: f32[32,32], index: 8, kind: input, shape index: {}]   ;;  %s938_s9 = inlined_call_operand.vmem [shape: f32[1,32], index: 9, kind: input, shape index: {}]   ;;  %s939_s10 = inlined_call_operand.vmem [shape: f32[32,3], index: 10, kind: input, shape index: {}]   ;;  %s940_s11 = inlined_call_operand.vmem [shape: f32[1,3], index: 11, kind: input, shape index: {}]   ;;  %s941_s12 = inlined_call_operand.vmem [shape: f32[8,3], index: 12, kind: output, shape index: {}]  }
   0x1   :  { %18 = vsyncpa [#allocation3], 0 }
   0x2   :  { %19 = vsyncpa [#allocation7], 0  ;;  %s26_s23 = sshll.u32 %s929_s0, 4  ;;  %s746_s24 = smov [#allocation6]   ;;  %s27_s23 = int_to_ptr.vmem [resolvable:$true] %s26_s23 }
   0x3   :  { %s52_s25 = sshll.u32 %s746_s24, 4  ;;  %s662_s28 = scalar_lea.hbm %s934_s5, 16  ;;  %s53_s25 = int_to_ptr.vmem [resolvable:$true] %s52_s25 }
   0x4   :  { %p663_p0 = scmp.ne.s32.totalorder %s934_s5, %s662_s28  ;;  %p666_p1 = scmp.lt.u32.totalorder %s662_s28, %s934_s5 }
   0x6   :  { %p668_p2 = pnand %p666_p1, %p663_p0 }
   0x8   :  { %671 = shalt.err (!%p668_p2)
}
   0x9   :  { %s672_s15 = scalar_lea.vmem %s53_s25, 16  ;;  %s676_s0 = scalar_lea.vmem %s53_s25, 32 }
   0xa   :  { %p673_p3 = scmp.ne.s32.totalorder %s53_s25, %s672_s15  ;;  %p677_p4 = scmp.lt.s32.totalorder %s53_s25, %s53_s25 }
   0xb   :  { %p678_p5 = scmp.lt.s32.totalorder %s676_s0, %s672_s15 }
   0xd   :  { %p679_p6 = por %p678_p5, %p677_p4 }
   0xf   :  { %p680_p7 = pnand %p679_p6, %p673_p3 }
  0x11   :  { %683 = shalt.err (!%p680_p7)
}
  0x12   :  { %55 = dma.hbm_to_vmem [thread:$0]  %s934_s5, 16, %s53_s25, [#allocation7]  }
  0x13   :  { %s684_s18 = scalar_lea.vmem %s27_s23, 16  ;;  %p689_p9 = scmp.lt.s32.totalorder %s27_s23, %s27_s23 }
  0x14   :  { %p685_p8 = scmp.ne.s32.totalorder %s27_s23, %s684_s18  ;;  %p690_p10 = scmp.lt.s32.totalorder %s684_s18, %s684_s18 }
  0x16   :  { %p691_p11 = por %p690_p10, %p689_p9 }
  0x18   :  { %p692_p12 = pnand %p691_p11, %p685_p8 }
  0x1a   :  { %695 = shalt.err (!%p692_p12)
}
  0x1b   :  { %s747_s19 = smov [#allocation2]   ;;  %s748_s20 = smov [#allocation5]  }
  0x1c   :  { %29 = dma.vmem_to_smem %s27_s23, 16, %s747_s19, [#allocation4]  }
  0x1d   :  { %s38_s21 = sshll.u32 %s748_s20, 4  ;;  %s749_s22 = smov [#allocation8]   ;;  %s39_s21 = int_to_ptr.vmem [resolvable:$true] %s38_s21 }
  0x1e   :  { %s65_s24 = sshll.u32 %s749_s22, 4  ;;  %s696_s5 = scalar_lea.hbm %s931_s2, 64  ;;  %s835_s24 = int_to_ptr.vmem [resolvable:$true] %s65_s24 }
  0x1f   :  { %p697_p13 = scmp.ne.s32.totalorder %s931_s2, %s696_s5  ;;  %p700_p0 = scmp.lt.u32.totalorder %s696_s5, %s931_s2 }
  0x21   :  { %p702_p1 = pnand %p700_p0, %p697_p13 }
  0x23   :  { %705 = shalt.err (!%p702_p1)
}
  0x24   :  { %s706_s23 = scalar_lea.vmem %s39_s21, 64  ;;  %p711_p3 = scmp.lt.s32.totalorder %s39_s21, %s39_s21 }
  0x25   :  { %p707_p2 = scmp.ne.s32.totalorder %s39_s21, %s706_s23  ;;  %p712_p4 = scmp.lt.s32.totalorder %s706_s23, %s706_s23 }
  0x27   :  { %p713_p5 = por %p712_p4, %p711_p3 }
  0x29   :  { %p714_p6 = pnand %p713_p5, %p707_p2 }
  0x2b   :  { %717 = shalt.err (!%p714_p6)
}
  0x2c   :  { %41 = dma.hbm_to_vmem [thread:$0]  %s931_s2, 64, %s39_s21, [#allocation3]  }
  0x2d   :  { %s718_s16 = scalar_lea.hbm %s937_s8, 512 }
  0x2e   :  { %p719_p7 = scmp.ne.s32.totalorder %s937_s8, %s718_s16  ;;  %p722_p8 = scmp.lt.u32.totalorder %s718_s16, %s937_s8 }
  0x30   :  { %p724_p9 = pnand %p722_p8, %p719_p7 }
  0x32   :  { %727 = shalt.err (!%p724_p9)
}
  0x33   :  { %s728_s22 = scalar_lea.vmem %s835_s24, 512  ;;  %p733_p11 = scmp.lt.s32.totalorder %s835_s24, %s835_s24 }
  0x34   :  { %p729_p10 = scmp.ne.s32.totalorder %s835_s24, %s728_s22  ;;  %p734_p12 = scmp.lt.s32.totalorder %s728_s22, %s728_s22 }
  0x36   :  { %p735_p13 = por %p734_p12, %p733_p11 }
  0x38   :  { %p736_p0 = pnand %p735_p13, %p729_p10 }
  0x3a   :  { %739 = shalt.err (!%p736_p0)
}
  0x3b   :  { %s750_s2 = smov 128   ;;  %s751_s21 = smov 8  }
  0x3c   :  { %71 = dma.hbm_to_vmem [thread:$0]  %s937_s8, 512, %s835_s24, [#allocation7], %s750_s2, %s750_s2, %s751_s21  }
  0x3d   :  { %740 = dma.done.wait [#allocation4], 16  }
  0x3e   :  { %741 = vsyncadd [#allocation4], 4294967280 }
  0x3f   :  { %742 = dma.done.wait [#allocation3], 64  }
  0x40   :  { %743 = vsyncadd [#allocation3], 4294967232 }
  0x41   :  { %744 = dma.done.wait [#allocation7], 528  }
  0x42   :  { %745 = vsyncadd [#allocation7], 4294966768 }
  0x43   :  { %90 = sfence }
  0x44   :  { %v92_v0 = vld [vmem:[#allocation5] sm:$0xf]  ;;  %vm104_vm0 = vcmask 1043456   ;;  %v752_v2 = vmov 0.0   ;;  %vm753_vm1 = vmmov 0   ;;  %vm100_vm2 = vcmask 31744  }
  0x45   :  { %v91_v1 = vld [vmem:[%s930_s1] sm:$0xff]  ;;  %580 = vmatprep.subr.mxu0 %v752_v2  ;;  %582 = vmatprep.mubr.msk.f32.mxu0 %vm753_vm1, %v752_v2  ;;  %v184_v4 = vld [vmem:[%s933_s4 + $0x8] sm:$0xff]  ;;  %v754_v5 = vmov 0.0|0.0   ;;  %v185_v7 = vld [vmem:[%s933_s4 + $0x10] sm:$0xff]  ;;  %s178_s17 = sld [smem:[#allocation2]]  ;;  %vm194_vm4 = vcmask 261120  }
  0x46   :  { %v183_v3 = vld [vmem:[%s933_s4] sm:$0xff]  ;;  %581 = vmatpush3.msk.msra.mxu0 %vm104_vm0, %v92_v0  ;;  %629 = vmatprep.subr.bf16.mxu1 %v754_v5  ;;  %v186_v8 = vld [vmem:[%s933_s4 + $0x18] sm:$0xff]  ;;  %v274_v11 = vld [vmem:[%s935_s6 + $0x8] sm:$0xff]  ;;  %s552_s5 = sld [smem:[#allocation2 + $0x2]]  ;;  %vm535_vm8 = vcmask 23552  }
  0x47   :  { %v630_v6 = vpack.c.bf16 %v184_v4, %v183_v3  ;;  %583 = vmatmul.mubr.msk.f32.vlgmr.msra.gmra.mrb[0].mxu0 %vm100_vm2, %v91_v1  ;;  %593 = vmatprep.mubr.msk.f32.mxu1 %vm753_vm1, %v752_v2  ;;  %v633_v9 = vpack.c.bf16 %v186_v8, %v185_v7  ;;  %v273_v10 = vld [vmem:[%s935_s6] sm:$0xff]  ;;  %v275_v20 = vld [vmem:[%s935_s6 + $0x10] sm:$0xff]  ;;  %v276_v21 = vld [vmem:[%s935_s6 + $0x18] sm:$0xff] }
  0x48   :  { %635 = vmatprep.subr.bf16.mxu0 %v754_v5  ;;  %604 = vmatprep.mubr.msk.f32.mxu0 %vm753_vm1, %v752_v2  ;;  %v636_v12 = vpack.c.bf16 %v274_v11, %v273_v10  ;;  %v544_v13 = vld [vmem:[%s932_s3] ss:$0 sm:$0xff]  ;;  %v639_v22 = vpack.c.bf16 %v276_v21, %v275_v20  ;;  %v362_v23 = vld [vmem:[#allocation8] sm:$0xff]  ;;  %v363_v24 = vld [vmem:[#allocation8 + $0x8] sm:$0xff]  ;;  %s549_s3 = sld [smem:[#allocation2 + $0x1]] }
  0x49   :  { %631 = vmatpush3.bf16.msra.mxu1 %v630_v6  ;;  %v642_v25 = vpack.c.bf16 %v363_v24, %v362_v23  ;;  %v547_v26 = vld [vmem:[#allocation6] ss:$0 sm:$0xff]  ;;  %v364_v33 = vld [vmem:[#allocation8 + $0x10] sm:$0xff]  ;;  %v452_v37 = vld [vmem:[%s939_s10 + $0x8] sm:$0xff] }
  0x4a   :  { %632 = vmatprep.subr.bf16.mxu1 %v754_v5  ;;  %637 = vmatpush3.bf16.msra.mxu0 %v636_v12  ;;  %v365_v34 = vld [vmem:[#allocation8 + $0x18] sm:$0xff]  ;;  %v453_v46 = vld [vmem:[%s939_s10 + $0x10] sm:$0xff] }
  0x4b   :  { %638 = vmatprep.subr.bf16.mxu0 %v754_v5  ;;  %v180_v15 = vstv %s178_s17  ;;  %v645_v35 = vpack.c.bf16 %v365_v34, %v364_v33  ;;  %v451_v36 = vld [vmem:[%s939_s10] sm:$0xff]  ;;  %v454_v47 = vld [vmem:[%s939_s10 + $0x18] sm:$0xff] }
  0x4c   :  { %v648_v38 = vpack.c.bf16 %v452_v37, %v451_v36  ;;  %v550_v39 = vld [vmem:[%s936_s7] ss:$0 sm:$0xff]  ;;  %v359_v41 = vstv %s552_s5  ;;  %v651_v48 = vpack.c.bf16 %v454_v47, %v453_v46  ;;  %s555_s7 = sld [smem:[#allocation2 + $0x3]] }
  0x4d   :  { %634 = vmatpush3.bf16.msra.mxu1 %v633_v9  ;;  %v553_v49 = vld [vmem:[%s938_s9] ss:$0 sm:$0xff] }
  0x4e   :  { %641 = vmatprep.subr.bf16.mxu1 %v754_v5  ;;  %640 = vmatpush3.bf16.msra.mxu0 %v639_v22  ;;  %v270_v28 = vstv %s549_s3  ;;  %v556_v56 = vld [vmem:[%s940_s11] ss:$0 sm:$0xff] }
  0x4f   :  { %647 = vmatprep.subr.bf16.mxu0 %v754_v5 }
  0x52   :  { %v448_v51 = vstv %s555_s7 }
 0x11a   :  { %v174_v14 = vpop.f32.mrb[0].mxu0 }
 0x11b   :  { %v175_v16 = vadd.f32 %v544_v13, %v174_v14  ;;  %v584_v17 = vpop.f32.mrb[1].mxu0 }
 0x11d   :  { %vm179_vm3 = vcmp.gt.f32.partialorder %v175_v16, 0.0  ;;  %v181_v18 = vmul.f32 %v180_v15, %v175_v16 }
 0x11f   :  { %v182_v19 = vsel %vm179_vm3, %v175_v16, %v181_v18 }
 0x120   :  { %594 = vmatmul.mubr.msk.f32.vlgmr.msra.gmra.mrb[0].mxu1 %vm194_vm4, %v182_v19 }
 0x121   :  { %615 = vmatprep.mubr.msk.f32.mxu1 %vm753_vm1, %v752_v2  ;;  %643 = vmatpush3.bf16.msra.mxu1 %v642_v25 }
 0x122   :  { %644 = vmatprep.subr.bf16.mxu1 %v754_v5 }
 0x125   :  { %646 = vmatpush3.bf16.msra.mxu1 %v645_v35 }
 0x1f3   :  { %v264_v27 = vpop.f32.mrb[0].mxu1 }
 0x1f4   :  { %v265_v29 = vadd.f32 %v547_v26, %v264_v27  ;;  %v595_v30 = vpop.f32.mrb[1].mxu1 }
 0x1f6   :  { %vm269_vm5 = vcmp.gt.f32.partialorder %v265_v29, 0.0  ;;  %v271_v31 = vmul.f32 %v270_v28, %v265_v29 }
 0x1f8   :  { %v272_v32 = vsel %vm269_vm5, %v265_v29, %v271_v31 }
 0x1f9   :  { %605 = vmatmul.mubr.msk.f32.vlgmr.msra.gmra.mrb[2].mxu0 %vm194_vm4, %v272_v32 }
 0x1fa   :  { %626 = vmatprep.mubr.msk.f32.mxu0 %vm753_vm1, %v752_v2  ;;  %649 = vmatpush3.bf16.msra.mxu0 %v648_v38 }
 0x1fb   :  { %650 = vmatprep.subr.bf16.mxu0 %v754_v5 }
 0x1fe   :  { %652 = vmatpush3.bf16.msra.mxu0 %v651_v48 }
 0x2cc   :  { %v353_v40 = vpop.f32.mrb[2].mxu0 }
 0x2cd   :  { %v354_v42 = vadd.f32 %v550_v39, %v353_v40  ;;  %v606_v43 = vpop.f32.mrb[3].mxu0 }
 0x2cf   :  { %vm358_vm6 = vcmp.gt.f32.partialorder %v354_v42, 0.0  ;;  %v360_v44 = vmul.f32 %v359_v41, %v354_v42 }
 0x2d1   :  { %v361_v45 = vsel %vm358_vm6, %v354_v42, %v360_v44 }
 0x2d2   :  { %616 = vmatmul.mubr.msk.f32.vlgmr.msra.gmra.mrb[2].mxu1 %vm194_vm4, %v361_v45 }
 0x3a5   :  { %v442_v50 = vpop.f32.mrb[2].mxu1 }
 0x3a6   :  { %v443_v52 = vadd.f32 %v553_v49, %v442_v50  ;;  %v617_v53 = vpop.f32.mrb[3].mxu1 }
 0x3a8   :  { %vm447_vm7 = vcmp.gt.f32.partialorder %v443_v52, 0.0  ;;  %v449_v54 = vmul.f32 %v448_v51, %v443_v52 }
 0x3aa   :  { %v450_v55 = vsel %vm447_vm7, %v443_v52, %v449_v54 }
 0x3ab   :  { %627 = vmatmul.mubr.msk.f32.vlgmr.msra.gmra.mrb[4].mxu0 %vm194_vm4, %v450_v55 }
 0x47e   :  { %v531_v57 = vpop.f32.mrb[4].mxu0 }
 0x47f   :  { %v532_v58 = vadd.f32 %v556_v56, %v531_v57  ;;  %v628_v59 = vpop.f32.mrb[5].mxu0 }
 0x481   :  { %536 = vst.msk [vmem:[%s941_s12] sm:$0xff] %vm535_vm8, %v532_v58 }
 0x482   :  { %541 = vsyncpa [#allocation3], 1 }
 0x483   :  { %542 = vsyncpa [#allocation7], 1 }
 0x484   :  { %543 = vsyncpa [#allocation4], 1 }

</bundles_post_ra>
